<compile_context>
chip_gen: v7x
topology: tpu7x:2x2x1
jax: 0.10.0
libtpu: 0.0.40
codegen_flags: <defaults>
</compile_context>

<pallas_src>
import jax
import jax.numpy as jnp
from jax.experimental import pallas as pl
from jax.experimental.pallas import tpu as pltpu

LANE = 128      # channel dims are zero-padded to a multiple of this (lane-dense)
SUBLANE = 8     # node-row tiles are multiples of this


def _round_up(x, m):
    return ((x + m - 1) // m) * m


def _chip_vmem_bytes():
    try:
        return int(pltpu.get_tpu_info().vmem_capacity_bytes)
    except Exception:          # fallback: most constrained generation (v7x, 64 MiB)
        return 64 * 1024 * 1024


def _vmem_estimate(n_pad, tm, c_pad, out_itemsize):
    """Explicit resident working-set estimate for the fused kernel (bytes)."""
    b = 2 * tm * n_pad * 2                   # A_hat row block, bf16, double-buffered
    b += 2 * n_pad * c_pad * 2               # X resident, bf16 (2 buffers allocated)
    b += 2 * c_pad * c_pad * 2               # per-layer weight block, bf16, 2 buffers
    b += 3 * 2 * c_pad * 4                   # gamma / beta / alpha layer blocks, f32
    b += 2 * n_pad * c_pad * out_itemsize    # resident output block
    b += n_pad * c_pad * (4 + 2)             # HH (f32) + H carry (bf16) scratch
    b += 2 * tm * c_pad * 4                  # per-tile matmul temporaries (f32)
    b += 3 * n_pad * c_pad * 4               # finalize temporaries (hh*hh, y, act)
    return int(b)


def _choose_tiling(n, c_pad, vmem_budget, out_itemsize, force_tiles=None):
    """Pick (tile_rows, n_pad, num_tiles): fewest row tiles whose working set fits."""
    n8 = _round_up(max(n, SUBLANE), SUBLANE)
    t = 1 if force_tiles is None else max(1, int(force_tiles))
    while True:
        tm = _round_up(-(-n8 // t), SUBLANE)
        n_pad = tm * t
        if tm == SUBLANE or _vmem_estimate(n_pad, tm, c_pad, out_itemsize) <= vmem_budget:
            return tm, n_pad, t
        t *= 2


def make_encoder_kernel(num_layers, num_tiles, tile_rows, n_real):
    """Fused GCN encoder.  Grid = (layer, row_tile), both sequential ('arbitrary')."""
    inv_n = 1.0 / float(n_real)       # BN stats over the *real* nodes only
    eps = 1e-5

    def kernel(a_ref,                 # (TM, N_pad)   bf16  A_hat row block (streamed)
               x_ref,                 # (N_pad, C_pad) bf16 node features (resident)
               w_ref,                 # (1, C_pad, C_pad) bf16 this layer's weight
               gamma_ref, beta_ref,   # (1, 1, C_pad) f32 BN affine
               alpha_ref,             # (1, 1, C_pad) f32 PReLU alpha (lane-broadcast)
               o_ref,                 # (N_pad, C_pad) resident output, written once
               hh_ref,                # scratch (N_pad, C_pad) f32  pre-BN activations
               h_ref):                # scratch (N_pad, C_pad) bf16 current layer input
        l = pl.program_id(0)          # layer index
        t = pl.program_id(1)          # row-tile index

        # Very first grid step: seed the layer carry with the (padded) node features.
        @pl.when(jnp.logical_and(l == 0, t == 0))
        def _():
            h_ref[...] = x_ref[...]

        # GCNConv for this row block: (A_blk @ H) @ W, f32 accumulation on the MXU.
        # (No bias: it cancels exactly under training-mode BatchNorm.)
        ah = jnp.dot(a_ref[...], h_ref[...], preferred_element_type=jnp.float32)
        hh = jnp.dot(ah.astype(jnp.bfloat16), w_ref[0],
                     preferred_element_type=jnp.float32)
        row0 = pl.multiple_of(t * tile_rows, tile_rows)
        hh_ref[pl.ds(row0, tile_rows), :] = hh

        # Last row tile of this layer: BN (batch stats folded into a single affine)
        # + PReLU over the full HH, then feed the next layer or emit the output.
        @pl.when(t == num_tiles - 1)
        def _():
            hh_all = hh_ref[...]
            # Single-pass sum / sum-of-squares: zero-padded rows contribute nothing,
            # so dividing by the real node count keeps the statistics exact.
            s = jnp.sum(hh_all, axis=0, keepdims=True)
            sq = jnp.sum(hh_all * hh_all, axis=0, keepdims=True)
            mean = s * inv_n
            var = sq * inv_n - mean * mean
            scale = gamma_ref[0] * jax.lax.rsqrt(var + eps)   # (1, C_pad)
            shift = beta_ref[0] - mean * scale
            y = hh_all * scale + shift                        # folded BN affine
            alpha = alpha_ref[0]                              # (1, C_pad)
            act = jnp.where(y > 0, y, alpha * y)              # PReLU

            @pl.when(l < num_layers - 1)
            def _():
                h_ref[...] = act.astype(h_ref.dtype)          # carry to next layer (bf16)

            @pl.when(l == num_layers - 1)
            def _():
                o_ref[...] = act.astype(o_ref.dtype)          # only HBM write

    return kernel


def fused_gcn_encoder(a_hat, x, w_stack, gamma_stack, beta_stack, alpha_stack, *,
                      c_out, tiles=None, out_dtype=jnp.float32):
    """Run the fused encoder.  a_hat: (N, N) f32, x: (N, C_in) f32."""
    n = a_hat.shape[0]
    num_layers, c_pad = w_stack.shape[0], w_stack.shape[-1]
    out_itemsize = jnp.dtype(out_dtype).itemsize

    chip_vmem = _chip_vmem_bytes()
    tm, n_pad, num_tiles = _choose_tiling(n, c_pad, int(0.80 * chip_vmem),
                                          out_itemsize, force_tiles=tiles)

    # Zero-pad nodes to a multiple of the row tile and features to the padded lanes.
    a_pad = jnp.pad(a_hat.astype(jnp.bfloat16), ((0, n_pad - n), (0, n_pad - n)))
    x_pad = jnp.pad(x.astype(jnp.bfloat16),
                    ((0, n_pad - n), (0, c_pad - x.shape[1])))

    est = _vmem_estimate(n_pad, tm, c_pad, out_itemsize)
    sem = ("arbitrary", "arbitrary")   # sequential layer carry + cross-tile BN stats
    if est > 16 * 1024 * 1024:         # most conservative default scoped VMEM (v5e)
        cparams = pltpu.CompilerParams(
            dimension_semantics=sem,
            vmem_limit_bytes=min(int(est * 1.25), int(0.90 * chip_vmem)))
    else:
        cparams = pltpu.CompilerParams(dimension_semantics=sem)

    kernel = make_encoder_kernel(num_layers, num_tiles, tm, n)

    grid_spec = pltpu.PrefetchScalarGridSpec(
        num_scalar_prefetch=0,
        grid=(num_layers, num_tiles),
        in_specs=[
            # A_hat row block; default double-buffering already hides the DMA here.
            pl.BlockSpec((tm, n_pad), lambda l, t: (t, 0)),
            pl.BlockSpec((n_pad, c_pad), lambda l, t: (0, 0)),        # X, resident
            pl.BlockSpec((1, c_pad, c_pad), lambda l, t: (l, 0, 0)),  # W of layer l
            pl.BlockSpec((1, 1, c_pad), lambda l, t: (l, 0, 0)),      # gamma
            pl.BlockSpec((1, 1, c_pad), lambda l, t: (l, 0, 0)),      # beta
            pl.BlockSpec((1, 1, c_pad), lambda l, t: (l, 0, 0)),      # PReLU alpha
        ],
        out_specs=pl.BlockSpec((n_pad, c_pad), lambda l, t: (0, 0)),
        scratch_shapes=[pltpu.VMEM((n_pad, c_pad), jnp.float32),      # HH (pre-BN)
                        pltpu.VMEM((n_pad, c_pad), jnp.bfloat16)],    # layer carry H
    )

    out = pl.pallas_call(
        kernel,
        out_shape=jax.ShapeDtypeStruct((n_pad, c_pad), out_dtype),
        grid_spec=grid_spec,
        compiler_params=cparams,
    )(a_pad, x_pad, w_stack, gamma_stack, beta_stack, alpha_stack)
    return out[:n, :c_out]


def build_gcn_norm_adj(edge_index, num_nodes, edge_weight=None):
    """Dense GCN-normalized adjacency: A_hat = D^{-1/2} (A + I_remaining) D^{-1/2}.
    A_hat[i, j] carries edge j -> i (messages flow source -> target).  Matches PyG
    add_remaining_self_loops: nodes with an existing self loop keep its weight."""
    src, dst = edge_index[0], edge_index[1]
    if edge_weight is None:
        edge_weight = jnp.ones(src.shape, jnp.float32)
    a = jnp.zeros((num_nodes, num_nodes), jnp.float32)
    a = a.at[dst, src].add(edge_weight)
    self_idx = jnp.where(src == dst, src, num_nodes)            # OOB => dropped
    has_self = jnp.zeros((num_nodes,), jnp.float32).at[self_idx].max(1.0, mode="drop")
    a = a + jnp.diag(1.0 - has_self)
    deg = jnp.sum(a, axis=1)
    dinv = jnp.where(deg > 0, jax.lax.rsqrt(deg), 0.0)
    return dinv[:, None] * a * dinv[None, :]


class BGRLEncoderPallas:
    """Mirrors BGRLEncoder parameter shapes (deterministic init); forward = fused kernel."""

    def __init__(self, in_channel, hidden_channels, key):
        dims = [in_channel] + list(hidden_channels)
        self.num_layer = len(hidden_channels)
        self.c_out = hidden_channels[-1]
        self.c_pad = _round_up(max(dims), LANE)        # lane-dense channel padding

        w_pads, g_pads, b_pads, a_pads = [], [], [], []
        self.ref_weights = []                           # f32, unpadded (for reference)
        for i in range(self.num_layer):
            key, wk = jax.random.split(key)
            fan_in, fan_out = dims[i], dims[i + 1]
            limit = (6.0 / (fan_in + fan_out)) ** 0.5   # glorot uniform (PyG GCNConv)
            w = jax.random.uniform(wk, (fan_in, fan_out), jnp.float32, -limit, limit)
            self.ref_weights.append(w)
            w_pads.append(jnp.pad(w, ((0, self.c_pad - fan_in),
                                      (0, self.c_pad - fan_out))))
            # Padded channels get gamma=0 so they stay exactly zero through BN.
            g_pads.append(jnp.pad(jnp.ones((1, fan_out), jnp.float32),
                                  ((0, 0), (0, self.c_pad - fan_out))))
            b_pads.append(jnp.zeros((1, self.c_pad), jnp.float32))
            a_pads.append(jnp.full((1, self.c_pad), 0.25, jnp.float32))  # PReLU default
        # GCNConv bias is omitted entirely: zero-init in PyG and cancelled by train-BN.
        self.w_stack = jnp.stack(w_pads).astype(jnp.bfloat16)      # (L, Cpad, Cpad)
        self.gamma_stack = jnp.stack(g_pads)                       # (L, 1, Cpad)
        self.beta_stack = jnp.stack(b_pads)                        # (L, 1, Cpad)
        self.alpha_stack = jnp.stack(a_pads)                       # (L, 1, Cpad)

    def __call__(self, x, edge_index, edge_weight=None, *, tiles=None,
                 out_dtype=jnp.float32):
        n = x.shape[0]
        a_hat = build_gcn_norm_adj(edge_index, n, edge_weight)
        return fused_gcn_encoder(a_hat, x, self.w_stack, self.gamma_stack,
                                 self.beta_stack, self.alpha_stack,
                                 c_out=self.c_out, tiles=tiles, out_dtype=out_dtype)


def encoder_reference(x, a_hat, weights, alpha=0.25, eps=1e-5):
    """Pure-JAX f32 reference of BGRLEncoder.forward (training-mode BN, default init)."""
    h = x
    for w in weights:
        hh = a_hat @ h @ w                              # GCNConv (bias = 0 at init)
        mean = jnp.mean(hh, axis=0, keepdims=True)
        var = jnp.var(hh, axis=0, keepdims=True)        # biased batch variance
        hn = (hh - mean) / jnp.sqrt(var + eps)          # gamma=1, beta=0 at init
        h = jnp.where(hn > 0, hn, alpha * hn)           # PReLU
    return h


if __name__ == "__main__":
    key = jax.random.PRNGKey(0)
    k_x, k_e, k_p = jax.random.split(key, 3)

    num_nodes = 16
    in_channel = 8
    hidden_channels = [32, 32]

    x = jax.random.normal(k_x, (num_nodes, in_channel), jnp.float32)

    # Deterministic edge_index: a ring plus extra directed edges.
    src_ring = jnp.arange(num_nodes, dtype=jnp.int32)
    dst_ring = (src_ring + 1) % num_nodes
    extra_src = jax.random.randint(k_e, (num_nodes,), 0, num_nodes, dtype=jnp.int32)
    extra_dst = (extra_src + 3) % num_nodes
    edge_index = jnp.stack([jnp.concatenate([src_ring, extra_src]),
                            jnp.concatenate([dst_ring, extra_dst])], axis=0)

    encoder = BGRLEncoderPallas(in_channel, hidden_channels, k_p)

    # Exercise both the multi-tile (row-streamed) path and the single-tile
    # (whole-graph-resident) path; they must agree.
    out_tiled = encoder(x, edge_index, tiles=2)
    out_full = encoder(x, edge_index)
    out_tiled, out_full = jax.block_until_ready((out_tiled, out_full))

    assert out_tiled.shape == (num_nodes, hidden_channels[-1])
    assert bool(jnp.all(jnp.isfinite(out_tiled)))
    assert bool(jnp.allclose(out_tiled, out_full, atol=1e-2, rtol=1e-2))

    # Pure-JAX f32 reference (kernel uses bf16 A_hat/X/W, so tolerance is loose).
    a_hat_f32 = build_gcn_norm_adj(edge_index, num_nodes)
    ref = encoder_reference(x, a_hat_f32, encoder.ref_weights)
    assert float(jnp.max(jnp.abs(out_tiled - ref))) < 0.25

    print("KERNEL_OK")
</pallas_src>

<mosaic_0001>
module attributes {stable_mosaic.version = 11 : i64} {
  func.func @kernel(%arg0: i32, %arg1: i32, %arg2: memref<8x16xbf16, #tpu.memory_space<vmem>>, %arg3: memref<16x128xbf16, #tpu.memory_space<vmem>>, %arg4: memref<1x128x128xbf16, #tpu.memory_space<vmem>>, %arg5: memref<1x1x128xf32, #tpu.memory_space<vmem>>, %arg6: memref<1x1x128xf32, #tpu.memory_space<vmem>>, %arg7: memref<1x1x128xf32, #tpu.memory_space<vmem>>, %arg8: memref<16x128xf32, #tpu.memory_space<vmem>>, %arg9: memref<16x128xf32, #tpu.memory_space<vmem>>, %arg10: memref<16x128xbf16, #tpu.memory_space<vmem>>) attributes {dimension_semantics = [#tpu.dimension_semantics<arbitrary>, #tpu.dimension_semantics<arbitrary>], iteration_bounds = array<i64: 2, 2>, scalar_prefetch = 0 : i64, scratch_operands = 2 : i64, tpu.core_type = #tpu.core_type<tc>, window_params = [{transform_indices = @transform_0, window_bounds = array<i64: 8, 16>}, {pipeline_mode = #tpu.pipeline_mode<synchronous>, transform_indices = @transform_1, window_bounds = array<i64: 16, 128>}, {transform_indices = @transform_2, window_bounds = array<i64: 1, 128, 128>}, {transform_indices = @transform_3, window_bounds = array<i64: 1, 1, 128>}, {transform_indices = @transform_4, window_bounds = array<i64: 1, 1, 128>}, {transform_indices = @transform_5, window_bounds = array<i64: 1, 1, 128>}, {pipeline_mode = #tpu.pipeline_mode<synchronous>, transform_indices = @transform_6, window_bounds = array<i64: 16, 128>}]} {
    %c0_i32 = arith.constant 0 : i32
    %0 = arith.cmpi eq, %arg0, %c0_i32 : i32
    %c0_i32_0 = arith.constant 0 : i32
    %1 = arith.cmpi eq, %arg1, %c0_i32_0 : i32
    %2 = arith.andi %0, %1 : i1
    %3 = arith.extui %2 : i1 to i32
    %c0_i32_1 = arith.constant 0 : i32
    %4 = arith.cmpi ne, %3, %c0_i32_1 : i32
    scf.if %4 {
      %c0_11 = arith.constant 0 : index
      %c0_12 = arith.constant 0 : index
      %19 = vector.load %arg3[%c0_11, %c0_12] : memref<16x128xbf16, #tpu.memory_space<vmem>>, vector<16x128xbf16>
      %c0_13 = arith.constant 0 : index
      %c0_14 = arith.constant 0 : index
      %20 = vector.load %arg10[%c0_13, %c0_14] : memref<16x128xbf16, #tpu.memory_space<vmem>>, vector<16x128xbf16>
      tpu.vector_store %arg10[%c0_13, %c0_14], %19 {strides = array<i32>} : memref<16x128xbf16, #tpu.memory_space<vmem>>, vector<16x128xbf16>,
    } else {
    }
    %c0 = arith.constant 0 : index
    %c0_2 = arith.constant 0 : index
    %5 = vector.load %arg2[%c0, %c0_2] : memref<8x16xbf16, #tpu.memory_space<vmem>>, vector<8x16xbf16>
    %c0_3 = arith.constant 0 : index
    %c0_4 = arith.constant 0 : index
    %6 = vector.load %arg10[%c0_3, %c0_4] : memref<16x128xbf16, #tpu.memory_space<vmem>>, vector<16x128xbf16>
    %cst = arith.constant dense<0.000000e+00> : vector<8x128xf32>
    %7 = tpu.matmul %5, %6, %cst {dimension_numbers = #tpu.dot_dimension_numbers<[1], [0], [0], [1], [0, 0, 1, 1], [], []>} : vector<8x16xbf16>, vector<16x128xbf16>, vector<8x128xf32> -> vector<8x128xf32>
    %8 = arith.truncf %7 : vector<8x128xf32> to vector<8x128xbf16>
    %c0_5 = arith.constant 0 : index
    %c0_6 = arith.constant 0 : index
    %c0_7 = arith.constant 0 : index
    %9 = vector.load %arg4[%c0_5, %c0_6, %c0_7] : memref<1x128x128xbf16, #tpu.memory_space<vmem>>, vector<1x128x128xbf16>
    %10 = vector.shape_cast %9 : vector<1x128x128xbf16> to vector<128x128xbf16>
    %cst_8 = arith.constant dense<0.000000e+00> : vector<8x128xf32>
    %11 = tpu.matmul %8, %10, %cst_8 {dimension_numbers = #tpu.dot_dimension_numbers<[1], [0], [0], [1], [0, 0, 1, 1], [], []>} : vector<8x128xbf16>, vector<128x128xbf16>, vector<8x128xf32> -> vector<8x128xf32>
    %c8_i32 = arith.constant 8 : i32
    %12 = arith.muli %arg1, %c8_i32 : i32
    %13 = tpu.assume_multiple %12, 8 : i32
    %14 = arith.index_cast %13 : i32 to index
    %c0_9 = arith.constant 0 : index
    %15 = vector.load %arg9[%14, %c0_9] : memref<16x128xf32, #tpu.memory_space<vmem>>, vector<8x128xf32>
    tpu.vector_store %arg9[%14, %c0_9], %11 {strides = array<i32>} : memref<16x128xf32, #tpu.memory_space<vmem>>, vector<8x128xf32>,
    %c1_i32 = arith.constant 1 : i32
    %16 = arith.cmpi eq, %arg1, %c1_i32 : i32
    %17 = arith.extui %16 : i1 to i32
    %c0_i32_10 = arith.constant 0 : i32
    %18 = arith.cmpi ne, %17, %c0_i32_10 : i32
    scf.if %18 {
      %c0_11 = arith.constant 0 : index
      %c0_12 = arith.constant 0 : index
      %19 = vector.load %arg9[%c0_11, %c0_12] : memref<16x128xf32, #tpu.memory_space<vmem>>, vector<16x128xf32>
      %cst_13 = arith.constant dense<0.000000e+00> : vector<128xf32>
      %20 = vector.multi_reduction <add>, %19, %cst_13 [0] : vector<16x128xf32> to vector<128xf32>
      %21 = vector.shape_cast %20 : vector<128xf32> to vector<1x128xf32>
      %22 = arith.mulf %19, %19 : vector<16x128xf32>
      %cst_14 = arith.constant dense<0.000000e+00> : vector<128xf32>
      %23 = vector.multi_reduction <add>, %22, %cst_14 [0] : vector<16x128xf32> to vector<128xf32>
      %24 = vector.shape_cast %23 : vector<128xf32> to vector<1x128xf32>
      %cst_15 = arith.constant 6.250000e-02 : f32
      %25 = vector.broadcast %cst_15 : f32 to vector<1x128xf32>
      %26 = arith.mulf %21, %25 : vector<1x128xf32>
      %cst_16 = arith.constant 6.250000e-02 : f32
      %27 = vector.broadcast %cst_16 : f32 to vector<1x128xf32>
      %28 = arith.mulf %24, %27 : vector<1x128xf32>
      %29 = arith.mulf %26, %26 : vector<1x128xf32>
      %30 = arith.subf %28, %29 : vector<1x128xf32>
      %c0_17 = arith.constant 0 : index
      %c0_18 = arith.constant 0 : index
      %c0_19 = arith.constant 0 : index
      %31 = vector.load %arg5[%c0_17, %c0_18, %c0_19] : memref<1x1x128xf32, #tpu.memory_space<vmem>>, vector<1x1x128xf32>
      %32 = vector.shape_cast %31 : vector<1x1x128xf32> to vector<1x128xf32>
      %cst_20 = arith.constant 9.99999974E-6 : f32
      %33 = vector.broadcast %cst_20 : f32 to vector<1x128xf32>
      %34 = arith.addf %30, %33 : vector<1x128xf32>
      %35 = math.rsqrt %34 : vector<1x128xf32>
      %36 = arith.mulf %32, %35 : vector<1x128xf32>
      %c0_21 = arith.constant 0 : index
      %c0_22 = arith.constant 0 : index
      %c0_23 = arith.constant 0 : index
      %37 = vector.load %arg6[%c0_21, %c0_22, %c0_23] : memref<1x1x128xf32, #tpu.memory_space<vmem>>, vector<1x1x128xf32>
      %38 = vector.shape_cast %37 : vector<1x1x128xf32> to vector<1x128xf32>
      %39 = arith.mulf %26, %36 : vector<1x128xf32>
      %40 = arith.subf %38, %39 : vector<1x128xf32>
      %41 = vector.broadcast %36 : vector<1x128xf32> to vector<16x128xf32>
      %42 = arith.mulf %19, %41 : vector<16x128xf32>
      %43 = vector.broadcast %40 : vector<1x128xf32> to vector<16x128xf32>
      %44 = arith.addf %42, %43 : vector<16x128xf32>
      %c0_24 = arith.constant 0 : index
      %c0_25 = arith.constant 0 : index
      %c0_26 = arith.constant 0 : index
      %45 = vector.load %arg7[%c0_24, %c0_25, %c0_26] : memref<1x1x128xf32, #tpu.memory_space<vmem>>, vector<1x1x128xf32>
      %46 = vector.shape_cast %45 : vector<1x1x128xf32> to vector<1x128xf32>
      %cst_27 = arith.constant 0.000000e+00 : f32
      %47 = vector.broadcast %cst_27 : f32 to vector<16x128xf32>
      %48 = arith.cmpf ogt, %44, %47 : vector<16x128xf32>
      %49 = vector.broadcast %46 : vector<1x128xf32> to vector<16x128xf32>
      %50 = arith.mulf %49, %44 : vector<16x128xf32>
      %51 = arith.select %48, %44, %50 : vector<16x128xi1>, vector<16x128xf32>
      %c1_i32_28 = arith.constant 1 : i32
      %52 = arith.cmpi slt, %arg0, %c1_i32_28 : i32
      %53 = arith.extui %52 : i1 to i32
      %c0_i32_29 = arith.constant 0 : i32
      %54 = arith.cmpi ne, %53, %c0_i32_29 : i32
      scf.if %54 {
        %58 = arith.truncf %51 : vector<16x128xf32> to vector<16x128xbf16>
        %c0_32 = arith.constant 0 : index
        %c0_33 = arith.constant 0 : index
        %59 = vector.load %arg10[%c0_32, %c0_33] : memref<16x128xbf16, #tpu.memory_space<vmem>>, vector<16x128xbf16>
        tpu.vector_store %arg10[%c0_32, %c0_33], %58 {strides = array<i32>} : memref<16x128xbf16, #tpu.memory_space<vmem>>, vector<16x128xbf16>,
      } else {
      }
      %c1_i32_30 = arith.constant 1 : i32
      %55 = arith.cmpi eq, %arg0, %c1_i32_30 : i32
      %56 = arith.extui %55 : i1 to i32
      %c0_i32_31 = arith.constant 0 : i32
      %57 = arith.cmpi ne, %56, %c0_i32_31 : i32
      scf.if %57 {
        %c0_32 = arith.constant 0 : index
        %c0_33 = arith.constant 0 : index
        %58 = vector.load %arg8[%c0_32, %c0_33] : memref<16x128xf32, #tpu.memory_space<vmem>>, vector<16x128xf32>
        tpu.vector_store %arg8[%c0_32, %c0_33], %51 {strides = array<i32>} : memref<16x128xf32, #tpu.memory_space<vmem>>, vector<16x128xf32>,
      } else {
      }
    } else {
    }
    return
  }
  func.func @transform_0(%arg0: i32, %arg1: i32) -> (i32, i32) {
    %c0_i32 = arith.constant 0 : i32
    %c0_i32_0 = arith.constant 0 : i32
    return %arg1, %c0_i32 : i32, i32
  }
  func.func @transform_1(%arg0: i32, %arg1: i32) -> (i32, i32) {
    %c0_i32 = arith.constant 0 : i32
    %c0_i32_0 = arith.constant 0 : i32
    %c0_i32_1 = arith.constant 0 : i32
    return %c0_i32, %c0_i32_0 : i32, i32
  }
  func.func @transform_2(%arg0: i32, %arg1: i32) -> (i32, i32, i32) {
    %c0_i32 = arith.constant 0 : i32
    %c0_i32_0 = arith.constant 0 : i32
    %c0_i32_1 = arith.constant 0 : i32
    return %arg0, %c0_i32, %c0_i32_0 : i32, i32, i32
  }
  func.func @transform_3(%arg0: i32, %arg1: i32) -> (i32, i32, i32) {
    %c0_i32 = arith.constant 0 : i32
    %c0_i32_0 = arith.constant 0 : i32
    %c0_i32_1 = arith.constant 0 : i32
    return %arg0, %c0_i32, %c0_i32_0 : i32, i32, i32
  }
  func.func @transform_4(%arg0: i32, %arg1: i32) -> (i32, i32, i32) {
    %c0_i32 = arith.constant 0 : i32
    %c0_i32_0 = arith.constant 0 : i32
    %c0_i32_1 = arith.constant 0 : i32
    return %arg0, %c0_i32, %c0_i32_0 : i32, i32, i32
  }
  func.func @transform_5(%arg0: i32, %arg1: i32) -> (i32, i32, i32) {
    %c0_i32 = arith.constant 0 : i32
    %c0_i32_0 = arith.constant 0 : i32
    %c0_i32_1 = arith.constant 0 : i32
    return %arg0, %c0_i32, %c0_i32_0 : i32, i32, i32
  }
  func.func @transform_6(%arg0: i32, %arg1: i32) -> (i32, i32) {
    %c0_i32 = arith.constant 0 : i32
    %c0_i32_0 = arith.constant 0 : i32
    %c0_i32_1 = arith.constant 0 : i32
    return %c0_i32, %c0_i32_0 : i32, i32
  }
}

</mosaic_0001>

<bundles_post_ra>
// kernel: tpu_custom_call.1
= control target key start
LH: loop header
LB: loop body
LE: loop exit
PB: predicated region body
PF: predicated region fallthrough
CT: control target
= control target key end

     0   :  { %s1563_s0 = inlined_call_operand.hbm [shape: bf16[16,16], index: 0, kind: input, shape index: {}]   ;;  %s1564_s1 = inlined_call_operand.hbm [shape: bf16[16,128], index: 1, kind: input, shape index: {}]   ;;  %s1565_s2 = inlined_call_operand.hbm [shape: bf16[2,128,128], index: 2, kind: input, shape index: {}]   ;;  %s1566_s3 = inlined_call_operand.vmem [shape: f32[2,1,128], index: 3, kind: input, shape index: {}]   ;;  %s1567_s4 = inlined_call_operand.vmem [shape: f32[2,1,128], index: 4, kind: input, shape index: {}]   ;;  %s1568_s5 = inlined_call_operand.vmem [shape: f32[2,1,128], index: 5, kind: input, shape index: {}]   ;;  %s1569_s6 = inlined_call_operand.hbm [shape: f32[16,128], index: 6, kind: output, shape index: {}]  }
   0x1   :  { %1583 = sst [smem:[#allocation24_spill]] %s1563_s0 }
   0x2   :  { %1584 = sst [smem:[#allocation25_spill]] %s1569_s6 }
   0x3   :  { %11 = vsyncpa [#allocation5], 0 }
   0x4   :  { %13 = vsyncpa [#allocation5 + $0x1], 0 }
   0x5   :  { %14 = vsyncpa [#allocation8], 0 }
   0x6   :  { %15 = vsyncpa [#allocation6], 0  ;;  %s1203_s21 = smov 0   ;;  %s1205_s22 = smov 0  }
   0x7   :  { %s1207_s23 = smov 0   ;;  %s1209_s24 = smov 0  }
   0x8   :  { %s1211_s25 = smov 0   ;;  %s1213_s26 = smov 0  }
   0x9   :  { %s1215_s27 = smov 0   ;;  %s1217_s28 = smov 0  }
   0xa   :  { %s1219_s29 = smov 0   ;;  %s1221_s30 = smov 0  }
   0xb   :  { %s1223_s7 = smov 0  }
   0xc LB: > { %1585 = sst [smem:[#allocation15_spill]] %s1124_s23  ;;  %s30_s8 = sadd.s32 1, %s1148_s29  ;;  %s1156_s7 = sphi %s1223_s7, %s21_s7   ;;  %s1152_s30 = sphi %s1221_s30, %s1626_s30   ;;  %s1148_s29 = sphi %s1219_s29, %s1625_s29   ;;  %s1144_s28 = sphi %s1217_s28, %s1617_s28   ;;  %s1140_s27 = sphi %s1215_s27, %s1624_s27   ;;  %s1136_s26 = sphi %s1213_s26, %s1615_s26   ;;  %s1132_s25 = sphi %s1211_s25, %s1623_s25   ;;  %s1128_s24 = sphi %s1209_s24, %s1622_s24   ;;  %s1124_s23 = sphi %s1207_s23, %s1613_s23   ;;  %s1120_s22 = sphi %s1205_s22, %s1621_s22   ;;  %s1116_s21 = sphi %s1203_s21, %s1620_s21  }
   0xd   : > { %1586 = sst [smem:[#allocation16_spill]] %s1136_s26  ;;  %s33_s9 = sadd.s32 1, %s1152_s30 }
   0xe   : > { %1587 = sst [smem:[#allocation17_spill]] %s1148_s29  ;;  %p31_p0 = scmp.ge.s32.totalorder %s30_s8, 2 }
   0xf   : > { %1588 = sst [smem:[#allocation18_spill]] %s1152_s30  ;;  %s40_s10 = sadd.s32 1, %s1136_s26 }
  0x10   : > { %1589 = sst [smem:[#allocation19_spill]] %s1156_s7  ;;  %p47_p1 = scmp.ne.s32.totalorder %s1136_s26, %s1132_s25 }
  0x11   : > { %p48_p2 = scmp.eq.s32.totalorder %s1156_s7, 0  ;;  %s1628_s8 = smov (%p31_p0, %s30_s8), 0 }
  0x12   : > { %1590 = sst [smem:[#allocation20_spill]] %s1628_s8  ;;  %s1630_s9 = smov (!%p31_p0, %s33_s9), %s1152_s30 }
  0x13   : > { %s37_s11 = ssub.s32 %s1148_s29, %s1628_s8  ;;  %p1271_p3 = por %p48_p2, %p47_p1 }
  0x14   : > { %p35_p4 = scmp.ge.s32.totalorder %s1630_s9, 2  ;;  %p38_p5 = scmp.eq.s32.totalorder %s37_s11, 0 }
  0x15   : > { %s87_s13 = sadd.s32 1, %s1124_s23  ;;  %p94_p7 = scmp.ne.s32.totalorder %s1124_s23, %s1120_s22 }
  0x16   : > { %s1632_s9 = smov (%p35_p4, %s1630_s9), 0  ;;  %p829_p11 = scmp.lt.s32.totalorder %s1156_s7, 4 }
  0x17   : > { %1592 = sst [smem:[#allocation21_spill]] %s1632_s9  ;;  %s84_s15 = ssub.s32 %s1152_s30, %s1632_s9 }
  0x18   : > { %s1281_s14 = scalar_select %p38_p5, %s1136_s26, %s40_s10  }
  0x19   : > { %p85_p8 = scmp.eq.s32.totalorder %s84_s15, 0  ;;  %p96_p10 = por %p94_p7, %p48_p2 }
  0x1a   : > { %1593 = sst [smem:[#allocation22_spill]] %s1281_s14  ;;  %s236_s17 = sand.u32 1, %s1156_s7  }
  0x1b   : > { %s1292_s16 = scalar_select %p85_p8, %s1124_s23, %s87_s13  }
  0x1c   : > { %s238_s18 = sand.u32 1, %s1136_s26   ;;  %s740_s20 = sshll.u32 %s1148_s29, 6 }
  0x1d   : > { %1594 = sst [smem:[#allocation23_spill]] %s1292_s16  ;;  %s739_s19 = sshll.u32 %s238_s18, 2 }
  0x1e   : > { %s1595_s0 = sld [smem:[#allocation24_spill]]  ;;  %s240_s10 = scalar_lea.vmem [#allocation4], %s739_s19 }
  0x1f   : > { %s247_s15 = sshll.u32 %s240_s10, 4  ;;  %p1305_p12 = pnand %p829_p11, %p1271_p3  ;;  %s1309_s15 = int_to_ptr.vmem [resolvable:$true] %s247_s15 }
  0x20   : > { %p1311_p13 = pnand %p829_p11, %p96_p10  ;;  %s1315_s8 = scalar_lea.sflag [#allocation5], %s236_s17 }
  0x21   : > { %p942_p1 = pneg %p1305_p12 }
  0x22   : > { %s1597_s18 = scalar_select %p1311_p13, 1, 0 }
  0x24   : > { %s1301_s6 = scalar_lea.hbm %s1595_s0, %s740_s20  ;;  %s945_s11 = scalar_lea.hbm %s1595_s0, 128 }
  0x25   : > { %s940_s20 = scalar_lea.hbm %s1301_s6, 64  ;;  %p946_p4 = scmp.lt.u32.totalorder %s1301_s6, %s1595_s0 }
  0x26   : > { %p941_p0 = scmp.ne.s32.totalorder %s1301_s6, %s940_s20  ;;  %p947_p5 = scmp.lt.u32.totalorder %s945_s11, %s940_s20 }
  0x27   : > { %p949_p8 = scmp.lt.u32.totalorder %s940_s20, %s1301_s6 }
  0x28   : > { %p943_p2 = pnand %p942_p1, %p941_p0  ;;  %p948_p7 = por %p947_p5, %p946_p4 }
  0x2a   : > { %p944_p3 = pneg %p943_p2  ;;  %p950_p10 = por %p949_p8, %p948_p7 }
  0x2c   : > { %p951_p11 = pnand %p950_p10, %p944_p3 }
  0x2e   : > { %954 = shalt.err (!%p951_p11)
}
  0x2f   : > { %s955_s17 = scalar_lea.vmem %s1309_s15, 64  ;;  %s1158_s12 = smov [#allocation4]  }
  0x30   : > { %p956_p0 = scmp.ne.s32.totalorder %s1309_s15, %s955_s17  ;;  %s960_s19 = sshll.u32 %s1158_s12, 4  ;;  %s961_s19 = int_to_ptr.vmem [resolvable:$false] %s960_s19 }
  0x31   : > { %s962_s9 = scalar_lea.vmem %s961_s19, 128  ;;  %p963_p6 = scmp.lt.s32.totalorder %s1309_s15, %s961_s19 }
  0x32   : > { %p958_p2 = pnand %p956_p0, %p942_p1  ;;  %p964_p4 = scmp.lt.s32.totalorder %s962_s9, %s955_s17 }
  0x34   : > { %p959_p9 = pneg %p958_p2  ;;  %p965_p5 = por %p964_p4, %p963_p6 }
  0x36   : > { %p966_p7 = pnand %p965_p5, %p959_p9 }
  0x38   : > { %969 = shalt.err (!%p966_p7)
}
  0x39   : > { %824 = dma.hbm_to_vmem [thread:$0]  (!%p1305_p12), %s1301_s6, 64, %s1309_s15, %s1315_s8  }
  0x3a   : > { %s1344_s20 = sadd.s32 4294967295, %s1156_s7   ;;  %p736_p6 = scmp.ge.s32.totalorder %s1156_s7, 1 }
  0x3b   : > { %p1578_p9 = scmp.eq.s32.totalorder %s1344_s20, 0  ;;  %p210_p1 = scmp.lt.s32.totalorder %s1156_s7, 5 }
  0x3c   : > { %p1598_p3 = scmp.ne.s32.totalorder %s1132_s25, %s1128_s24  ;;  %p1600_p10 = scmp.ne.s32.totalorder %s1120_s22, %s1116_s21 }
  0x3d   : > { %p1367_p12 = pnand %p736_p6, %p210_p1  ;;  %s1159_s15 = smov [#allocation7]  }
  0x3e   : > { %p1354_p8 = por %p1578_p9, %p1598_p3  ;;  %p1363_p11 = por %p1600_p10, %p1578_p9 }
  0x3f   : > { %s1602_s6 = scalar_select %p1367_p12, 1, 0 }
  0x40   : > { %s1599_s13 = scalar_select %p1354_p8, 1, 0 }
  0x41   : > { %s1601_s11 = scalar_select %p1363_p11, 1, 0 }
  0x42   : > { %s222_s10 = sshll.u32 %s1159_s15, 4  ;;  %p817_p0 = pneg %p1367_p12  ;;  %s1371_s10 = int_to_ptr.vmem [resolvable:$true] %s222_s10 }
  0x43   : > { %s256_s24 = sand.u32 1, %s1124_s23   ;;  %s767_s17 = sshll.u32 %s1152_s30, 10 }
  0x44   : > { %p1379_p2 = pnand %p817_p0, %p1578_p9  ;;  %s741_s12 = sshll.u32 %s256_s24, 6 }
  0x45   : > { %s1386_s0 = scalar_lea.hbm %s1565_s2, %s767_s17  ;;  %s258_s29 = scalar_lea.vmem [#allocation9], %s741_s12 }
  0x46   : > { %s265_s15 = sshll.u32 %s258_s29, 4  ;;  %s970_s16 = scalar_lea.hbm %s1564_s1, 128  ;;  %s1412_s15 = int_to_ptr.vmem [resolvable:$true] %s265_s15 }
  0x47   : > { %p971_p4 = scmp.ne.s32.totalorder %s1564_s1, %s970_s16  ;;  %p972_p5 = pneg %p1379_p2 }
  0x48   : > { %p977_p1 = scmp.lt.u32.totalorder %s970_s16, %s1564_s1 }
  0x49   : > { %p973_p7 = pnand %p972_p5, %p971_p4 }
  0x4b   : > { %p974_p6 = pneg %p973_p7 }
  0x4d   : > { %p979_p3 = pnand %p977_p1, %p974_p6 }
  0x4f   : > { %982 = shalt.err (!%p979_p3)
}
  0x50   : > { %s983_s29 = scalar_lea.vmem %s1371_s10, 128  ;;  %p991_p11 = scmp.lt.s32.totalorder %s1371_s10, %s1371_s10 }
  0x51   : > { %p984_p10 = scmp.ne.s32.totalorder %s1371_s10, %s983_s29  ;;  %p992_p8 = scmp.lt.s32.totalorder %s983_s29, %s983_s29 }
  0x53   : > { %p986_p0 = pnand %p984_p10, %p972_p5  ;;  %p993_p12 = por %p992_p8, %p991_p11 }
  0x55   : > { %p987_p9 = pneg %p986_p0 }
  0x57   : > { %p994_p13 = pnand %p993_p12, %p987_p9 }
  0x59   : > { %997 = shalt.err (!%p994_p13)
}
  0x5a   : > { %s1160_s23 = smov 64   ;;  %s1161_s26 = smov 4  }
  0x5b   : > { %820 = dma.hbm_to_vmem [thread:$0]  (!%p1379_p2), %s1564_s1, 128, %s1371_s10, [#allocation8], %s1160_s23, %s1160_s23, %s1161_s26  }
  0x5c   : > { %s998_s14 = scalar_lea.hbm %s1386_s0, 1024  ;;  %p1604_p9 = scmp.ne.s32.totalorder %s1597_s18, 0 }
  0x5d   : > { %p999_p13 = scmp.ne.s32.totalorder %s1386_s0, %s998_s14  ;;  %s1003_s21 = scalar_lea.hbm %s1565_s2, 2048 }
  0x5e   : > { %p1000_p8 = pneg %p1604_p9  ;;  %p1004_p4 = scmp.lt.u32.totalorder %s1386_s0, %s1565_s2 }
  0x5f   : > { %p1005_p5 = scmp.lt.u32.totalorder %s1003_s21, %s998_s14  ;;  %p1007_p7 = scmp.lt.u32.totalorder %s998_s14, %s1386_s0 }
  0x60   : > { %p1001_p11 = pnand %p1000_p8, %p999_p13 }
  0x61   : > { %p1006_p2 = por %p1005_p5, %p1004_p4 }
  0x62   : > { %p1002_p12 = pneg %p1001_p11 }
  0x63   : > { %p1008_p6 = por %p1007_p7, %p1006_p2 }
  0x65   : > { %p1009_p1 = pnand %p1008_p6, %p1002_p12 }
  0x67   : > { %1012 = shalt.err (!%p1009_p1)
}
  0x68   : > { %s1013_s10 = scalar_lea.vmem %s1412_s15, 1024  ;;  %s1162_s9 = smov [#allocation9]  }
  0x69   : > { %p1014_p3 = scmp.ne.s32.totalorder %s1412_s15, %s1013_s10  ;;  %s1018_s24 = sshll.u32 %s1162_s9, 4  ;;  %s1019_s24 = int_to_ptr.vmem [resolvable:$false] %s1018_s24 }
  0x6a   : > { %s1020_s29 = scalar_lea.vmem %s1019_s24, 2048  ;;  %p1021_p13 = scmp.lt.s32.totalorder %s1412_s15, %s1019_s24 }
  0x6b   : > { %p1016_p10 = pnand %p1014_p3, %p1000_p8  ;;  %p1022_p11 = scmp.lt.s32.totalorder %s1020_s29, %s1013_s10 }
  0x6d   : > { %p1017_p0 = pneg %p1016_p10  ;;  %p1023_p4 = por %p1022_p11, %p1021_p13 }
  0x6f   : > { %p1024_p5 = pnand %p1023_p4, %p1017_p0 }
  0x71   : > { %1027 = shalt.err (!%p1024_p5)
}
  0x72   : > { %827 = dma.hbm_to_vmem [thread:$0]  (!%p1604_p9), %s1386_s0, 1024, %s1412_s15, %s1315_s8, %s1160_s23, %s1160_s23, %s1161_s26  }
  0x73   : > { %p1605_p8 = scmp.ne.s32.totalorder %s1602_s6, 0 }
  0x74   : > { %s297_s30 = sand.u32 (!%p1605_p8), 1, %s1344_s20   ;;  %s299_s7 = sand.u32 (!%p1605_p8), 1, %s1132_s25  }
  0x75   : > { %295 = sbr.rel (%p1605_p8) target bundleno = 673 (0x2a1), region = 44  ;;  %s745_s14 = sshll.u32 (!%p1605_p8), %s299_s7, 2 }
  0x76   : > { %s298_s16 = scalar_lea.sflag (!%p1605_p8), [#allocation5], %s297_s30  ;;  %s301_s17 = scalar_lea.vmem (!%p1605_p8), [#allocation4], %s745_s14 }
  0x77   : > { %p1606_p12 = scmp.ne.s32.totalorder (!%p1605_p8), %s1599_s13, 0 }
  0x7c   : > { %1099 = dma.done.wait (%p1606_p12), %s298_s16, 64  }
  0x7d   : > { %1101 = vsyncadd (%p1606_p12), %s298_s16, 4294967232  ;;  %p1607_p2 = scmp.eq.s32.totalorder %s1344_s20, 0 }
  0x7f   : > { %1103 = dma.done.wait (%p1607_p2), [#allocation8], 128   ;;  %p1608_p9 = pmov %p1607_p2 }
  0x80   : > { %s312_s0 = sand.u32 1, %s1120_s22   ;;  %p1609_p7 = scmp.ne.s32.totalorder %s1601_s11, 0 }
  0x81   : > { %1105 = vsyncadd (%p1608_p9), [#allocation8], 4294967168  ;;  %s747_s18 = sshll.u32 %s312_s0, 6 }
  0x82   : > { %s1456_s8 = scalar_lea.vmem [#allocation9], %s747_s18 }
  0x83   : > { %1107 = dma.done.wait (%p1609_p7), %s298_s16, 1024  }
  0x84   : > { %1109 = vsyncadd (%p1609_p7), %s298_s16, 4294966272  ;;  %p352_p6 = scmp.lt.s32.totalorder %s1144_s28, 1  ;;  %p362_p1 = scmp.eq.s32.totalorder %s1144_s28, 0 }
  0x85   : > { %p363_p3 = scmp.eq.s32.totalorder %s1140_s27, 0 }
  0x86   : > { %s1466_s13 = scalar_select %p352_p6, %s1144_s28, 1 }
  0x87   : > { %p364_p10 = pnand %p363_p3, %p362_p1 }
  0x88   : > { %s354_s23 = scalar_lea.vmem %s1566_s3, %s1466_s13  ;;  %s357_s21 = scalar_lea.vmem %s1567_s4, %s1466_s13  ;;  %v929_v0 = vld [vmem:[#allocation7] sm:$0xff] (!%p364_p10)  }
  0x89   : > { %s360_s10 = scalar_lea.vmem %s1568_s5, %s1466_s13  ;;  %367 = sbr.rel (%p364_p10) target bundleno = 144 (0x90), region = 60  ;;  %376 = vst [vmem:[#allocation3] sm:$0xff] (!%p364_p10), %v929_v0 }
  0x90 PF: > { %v378_v1 = vld [vmem:[#allocation3] sm:$0xff]  ;;  %v377_v2 = vld [vmem:[%s301_s17] sm:$0xf]  ;;  %v1163_v3 = vmov 0.0   ;;  %vm1164_vm0 = vmmov 0   ;;  %v930_v4 = vld [vmem:[%s1456_s8] sm:$0xff]  }
  0x91   : > { %779 = vmatprep.subr.bf16.mxu0 %v1163_v3  ;;  %781 = vmatprep.mubr.msk.bf16.mxu0 %vm1164_vm0, %v1163_v3  ;;  %vm379_vm1 = vcmask 130048   ;;  %v931_v5 = vld [vmem:[%s1456_s8 + $0x8] sm:$0xff]   ;;  %v932_v6 = vld [vmem:[%s1456_s8 + $0x10] sm:$0xff]   ;;  %v933_v7 = vld [vmem:[%s1456_s8 + $0x18] sm:$0xff]   ;;  %s758_s9 = sshll.u32 %s1140_s27, 3  ;;  %p759_p0 = scmp.ne.s32.totalorder %s1140_s27, 1 }
  0x92   : > { %780 = vmatpush3.bf16.msra.mxu0 %v378_v1  ;;  %785 = vmatprep.subr.bf16.mxu1 %v1163_v3  ;;  %v934_v8 = vld [vmem:[%s1456_s8 + $0x20] sm:$0xff]   ;;  %v935_v9 = vld [vmem:[%s1456_s8 + $0x28] sm:$0xff]   ;;  %v936_v10 = vld [vmem:[%s1456_s8 + $0x30] sm:$0xff]   ;;  %s529_s24 = scalar_lea.vmem [#allocation2], %s758_s9  ;;  %v565_v44 = vlaneseq (!%p759_p0)  ;;  %p761_p13 = scmp.ge.s32.totalorder (!%p759_p0), %s1144_s28, 1 }
  0x93   : > { %786 = vmatpush3.bf16.msra.mxu1 %v930_v4  ;;  %801 = vmatprep.mubr.msk.bf16.mxu1 %vm1164_vm0, %v1163_v3  ;;  %v937_v11 = vld [vmem:[%s1456_s8 + $0x38] sm:$0xff]  }
  0x94   : > { %787 = vmatprep.subr.bf16.mxu1 %v1163_v3  ;;  %v566_v45 = vshrl.u32 (!%p759_p0), %v565_v44, 7  ;;  %v557_v46 = vld [vmem:[%s354_s23] sm:$0x1] (!%p759_p0) }
  0x95   : > { %782 = vmatmul.mubr.msk.bf16.vlgmr.msra.gmra.mrb[0].mxu0 %vm379_vm1, %v377_v2  ;;  %v561_v50 = vld [vmem:[%s357_s21] sm:$0x1] (!%p759_p0) }
  0x96   : > { %v567_v47 = vsub.s32 (!%p759_p0), 0, %v566_v45  ;;  %v760_v57 = vld [vmem:[%s360_s10] ss:$0 sm:$0xff] (!%p759_p0) }
  0x97   : > { %788 = vmatpush3.bf16.msra.mxu1 %v931_v5 }
  0x98   : > { %789 = vmatprep.subr.bf16.mxu1 %v1163_v3 }
  0x9b   : > { %790 = vmatpush3.bf16.msra.mxu1 %v932_v6 }
  0x9c   : > { %791 = vmatprep.subr.bf16.mxu1 %v1163_v3 }
  0x9f   : > { %792 = vmatpush3.bf16.msra.mxu1 %v933_v7 }
  0xa0   : > { %793 = vmatprep.subr.bf16.mxu1 %v1163_v3 }
  0xa3   : > { %794 = vmatpush3.bf16.msra.mxu1 %v934_v8 }
  0xa4   : > { %795 = vmatprep.subr.bf16.mxu1 %v1163_v3 }
  0xa7   : > { %796 = vmatpush3.bf16.msra.mxu1 %v935_v9 }
  0xa8   : > { %797 = vmatprep.subr.bf16.mxu1 %v1163_v3 }
  0xab   : > { %798 = vmatpush3.bf16.msra.mxu1 %v936_v10 }
  0xac   : > { %799 = vmatprep.subr.bf16.mxu1 %v1163_v3 }
  0xaf   : > { %800 = vmatpush3.bf16.msra.mxu1 %v937_v11 }
 0x168   : > { %v417_v12 = vpop.f32.mrb[0].mxu0 }
 0x169   : > { %v423_v13 = vpack.c.bf16 %v417_v12, %v417_v12  ;;  %v783_v14 = vpop.f32.mrb[1].mxu0 }
 0x16a   : > { %v420_v15 = vpop.f32.mrb[2].mxu0 }
 0x16b   : > { %v784_v16 = vpop.f32.mrb[3].mxu0  ;;  %802 = vmatmul.mubr.bf16.vlgmr.msra.gmra.mrb[0].mxu1 %v423_v13 }
 0x23b   : > { %534 = sbr.rel (%p759_p0) target bundleno = 641 (0x281), region = 64 }
 0x23e   : > { %v522_v17 = vpop.f32.mrb[0].mxu1 }
 0x23f   : > { %530 = vst [vmem:[%s529_s24] sm:$0xff] %v522_v17  ;;  %v803_v18 = vpop.f32.mrb[1].mxu1 }
 0x240   : > { %v525_v19 = vpop.f32.mrb[2].mxu1 }
 0x241   : > { %v804_v20 = vpop.f32.mrb[3].mxu1 }
 0x246   : > { %v535_v21 = vld [vmem:[#allocation2] sm:$0xff]  ;;  %v536_v22 = vld [vmem:[#allocation2 + $0x8] sm:$0xff] }
 0x247   : > { %v537_v23 = vadd.f32 %v536_v22, %v535_v21  ;;  %v544_v24 = vmul.f32 %v535_v21, %v535_v21  ;;  %v545_v25 = vmul.f32 %v536_v22, %v536_v22 }
 0x249   : > { %v538_v26 = vrot.slane %v537_v23, 4  ;;  %v546_v27 = vadd.f32 %v545_v25, %v544_v24 }
 0x24b   : > { %v539_v28 = vadd.f32 %v538_v26, %v537_v23  ;;  %v547_v29 = vrot.slane %v546_v27, 4 }
 0x24d   : > { %v540_v30 = vrot.slane %v539_v28, 2  ;;  %v548_v31 = vadd.f32 %v547_v29, %v546_v27 }
 0x24f   : > { %v541_v32 = vadd.f32 %v540_v30, %v539_v28  ;;  %v549_v33 = vrot.slane %v548_v31, 2 }
 0x251   : > { %v542_v34 = vrot.slane %v541_v32, 1  ;;  %v550_v35 = vadd.f32 %v549_v33, %v548_v31 }
 0x253   : > { %v543_v36 = vadd.f32 %v542_v34, %v541_v32  ;;  %v551_v37 = vrot.slane %v550_v35, 1 }
 0x255   : > { %v552_v38 = vadd.f32 %v551_v37, %v550_v35  ;;  %v553_v39 = vmul.f32 0.0625, %v543_v36 }
 0x257   : > { %v554_v40 = vmul.f32 0.0625, %v552_v38  ;;  %v555_v41 = vmul.f32 %v553_v39, %v553_v39 }
 0x259   : > { %v556_v42 = vsub.f32 %v554_v40, %v555_v41 }
 0x25b   : > { %v558_v43 = vadd.f32 1e-05, %v556_v42 }
 0x25d   : > { %938 = vrsqrt.f32 %v558_v43 }
 0x267   : > { %v939_v48 = vpop.eup %938 }
 0x268   : > { %v560_v49 = vmul.f32 %v939_v48, %v557_v46 }
 0x26a   : > { %v562_v51 = vmul.f32 %v560_v49, %v553_v39  ;;  %v568_v52 = vrot.slane %v560_v49, %v567_v47 }
 0x26c   : > { %v563_v53 = vsub.f32 %v561_v50, %v562_v51  ;;  %v570_v54 = vmul.f32 %v568_v52, %v535_v21  ;;  %v571_v55 = vmul.f32 %v568_v52, %v536_v22 }
 0x26e   : > { %v576_v56 = vrot.slane %v563_v53, %v567_v47  ;;  %596 = sbr.rel (%p761_p13) target bundleno = 632 (0x278), region = 68 }
 0x270   : > { %v578_v58 = vadd.f32 %v576_v56, %v570_v54  ;;  %v579_v59 = vadd.f32 %v576_v56, %v571_v55 }
 0x272   : > { %vm581_vm2 = vcmp.gt.f32.partialorder %v578_v58, 0.0  ;;  %vm582_vm3 = vcmp.gt.f32.partialorder %v579_v59, 0.0  ;;  %v589_v60 = vmul.f32 %v760_v57, %v578_v58  ;;  %v590_v61 = vmul.f32 %v760_v57, %v579_v59 }
 0x274   : > { %v591_v62 = vsel %vm581_vm2, %v578_v58, %v589_v60  ;;  %v592_v63 = vsel %vm582_vm3, %v579_v59, %v590_v61 }
 0x275   : > { %v597_v0 = vpack.c.bf16 %v592_v63, %v591_v62 }
 0x277   : > { %598 = vst [vmem:[#allocation3] sm:$0xff] %v597_v0 }
 0x278 PF: > { %p762_p11 = scmp.ne.s32.totalorder %s1144_s28, 1 }
 0x279   : > { %603 = vst [vmem:[#allocation10] sm:$0xff] (!%p762_p11), %v591_v62  ;;  %604 = vst [vmem:[#allocation10 + $0x8] sm:$0xff] (!%p762_p11), %v592_v63 }
 0x27a   : > { %602 = sbr.rel (%p762_p11) target bundleno = 641 (0x281), region = 72 }
 0x281 PF: > { %p831_p4 = scmp.eq.s32.totalorder %s1344_s20, 3  ;;  %s1165_s17 = smov [#allocation10]  }
 0x282   : > { %s611_s0 = sshll.u32 %s1165_s17, 4  ;;  %s612_s0 = int_to_ptr.vmem [resolvable:$true] %s611_s0 }
 0x283   : > { %s1028_s18 = scalar_lea.vmem %s612_s0, 256  ;;  %p1035_p2 = scmp.lt.s32.totalorder %s612_s0, %s612_s0 }
 0x284   : > { %p1029_p5 = scmp.ne.s32.totalorder %s612_s0, %s1028_s18  ;;  %p1036_p9 = scmp.lt.s32.totalorder %s1028_s18, %s1028_s18 }
 0x286   : > { %p1030_p8 = pnand %p1029_p5, %p831_p4  ;;  %p1037_p7 = por %p1036_p9, %p1035_p2 }
 0x288   : > { %p1031_p12 = pneg %p1030_p8 }
 0x28a   : > { %p1038_p6 = pnand %p1037_p7, %p1031_p12 }
 0x28c   : > { %1041 = shalt.err (!%p1038_p6)
}
 0x28d   : > { %s1610_s13 = sld [smem:[#allocation25_spill]] }
 0x293   : > { %s1042_s6 = scalar_lea.hbm %s1610_s13, 256 }
 0x294   : > { %p1043_p1 = scmp.ne.s32.totalorder %s1610_s13, %s1042_s6  ;;  %p1048_p0 = scmp.lt.u32.totalorder %s1042_s6, %s1610_s13 }
 0x296   : > { %p1044_p3 = pnand %p1043_p1, %p831_p4 }
 0x298   : > { %p1045_p10 = pneg %p1044_p3 }
 0x29a   : > { %p1050_p13 = pnand %p1048_p0, %p1045_p10 }
 0x29c   : > { %1053 = shalt.err (!%p1050_p13)
}
 0x29d   : > { %s1166_s21 = smov 128   ;;  %s1167_s12 = smov 8  }
 0x29e   : > { %814 = dma.vmem_to_hbm [thread:$0]  (%p831_p4), %s612_s0, 256, %s1610_s13, [#allocation6], %s1166_s21, %s1166_s21, %s1167_s12  }
 0x29f   : > { %1111 = dma.done.wait (%p831_p4), [#allocation6], 256  }
 0x2a0   : > { %1113 = vsyncadd (%p831_p4), [#allocation6], 4294967040 }
 0x2a1 PF: > { %s1611_s9 = sld [smem:[#allocation19_spill]]  ;;  %s1612_s24 = sld [smem:[#allocation15_spill]] }
 0x2a2   : > { %s1613_s23 = sld [smem:[#allocation23_spill]]  ;;  %s1614_s27 = sld [smem:[#allocation16_spill]] }
 0x2a3   : > { %s1615_s26 = sld [smem:[#allocation22_spill]]  ;;  %s1616_s29 = sld [smem:[#allocation17_spill]] }
 0x2a4   : > { %s1617_s28 = sld [smem:[#allocation18_spill]]  ;;  %s1618_s30 = sld [smem:[#allocation20_spill]] }
 0x2a5   : > { %s1619_s14 = sld [smem:[#allocation21_spill]]  ;;  %s1620_s21 = smov %s1120_s22 }
 0x2a7   : > { %s21_s7 = sadd.s32 1, %s1611_s9   ;;  %s1621_s22 = smov %s1612_s24 }
 0x2a8   : > { %p18_p11 = scmp.ge.s32.totalorder %s21_s7, 6   ;;  %s1622_s24 = smov %s1132_s25 }
 0x2a9   : > { %s1623_s25 = smov %s1614_s27  ;;  %s1624_s27 = smov %s1616_s29 }
 0x2aa   : > { %s1625_s29 = smov %s1618_s30  ;;  %20 = sbr.rel (!%p18_p11) target bundleno = 12 (0xc), region = 122 }
 0x2ab   : > { %s1626_s30 = smov %s1619_s14 }
 0x2b1   :  { %627 = vsyncpa [#allocation5], 1 }
 0x2b2   :  { %629 = vsyncpa [#allocation5 + $0x1], 1 }
 0x2b3   :  { %630 = vsyncpa [#allocation8], 1 }
 0x2b4   :  { %631 = vsyncpa [#allocation6], 1 }
 0x2b5   :  { %633 = vsyncpa [#allocation6 + $0x1], 1 }

</bundles_post_ra>
